<compile_context>
chip_gen: v7x
topology: tpu7x:2x2x1
jax: 0.10.0
libtpu: 0.0.40
codegen_flags: <defaults>
</compile_context>

<pallas_src>
import functools

import jax
import jax.numpy as jnp
from jax.experimental import pallas as pl
from jax.experimental.pallas import tpu as pltpu


def _tcn1_kernel(x_ref, wmid_ref, cols_ref, sc4_ref, o_ref, *, seq_len, hidden):
    H = hidden
    L = seq_len
    BL = x_ref.shape[1]

    # ---- boundary masks, computed & materialized once ----------------------
    # They zero the padding taps at l==0 / l==L-1 and also kill the lane-roll
    # wrap-around / cross-batch leakage of the flattened slab.
    pos = jax.lax.broadcasted_iota(jnp.int32, (1, BL), 1) % L
    nf_row = (pos != 0).astype(jnp.float32)         # 0 at l == 0
    nl_row = (pos != (L - 1)).astype(jnp.float32)   # 0 at l == L-1
    nf = jnp.broadcast_to(nf_row, (H, BL))          # hoisted (H, BL) masks
    nl = jnp.broadcast_to(nl_row, (H, BL))

    def col(j):                                     # (H, 1) parameter column
        return cols_ref[j]

    # ---- layer 1: BN(1) -> Conv1d(1 -> H) -> ReLU  (VPU broadcast) ---------
    # cols 0..2 = per-tap weights (BN scale folded); cols 3..5 = per-tap bias
    # terms (BN shift folded, centre one also carries the conv bias).
    x = x_ref[...]                                  # (1, BL)
    xp = pltpu.roll(x, 1, axis=1)                   # x[l-1]
    xx = pltpu.roll(x, BL - 1, axis=1)              # x[l+1]
    h = (nf * (col(0) * xp + col(3))
         + (col(1) * x + col(4))
         + nl * (col(2) * xx + col(5)))             # (H, BL)
    h = jnp.maximum(h, 0.0)

    # ---- layers 2, 3: one MXU matmul each + output-side tap shift ----------
    # r = W_stacked @ h, W_stacked = [W_tap0*s; W_tap1*s; W_tap2*s]  (3H, H).
    def mid(h, w_idx, cbase):
        r = jnp.dot(wmid_ref[w_idx], h,
                    preferred_element_type=jnp.float32)          # (3H, BL)
        out = (nf * (pltpu.roll(r[:H], 1, axis=1) + col(cbase))
               + (r[H:2 * H] + col(cbase + 1))
               + nl * (pltpu.roll(r[2 * H:], BL - 1, axis=1) + col(cbase + 2)))
        return jnp.maximum(out, 0.0)

    h = mid(h, 0, 6)    # layer 2: bias columns 6..8
    h = mid(h, 1, 9)    # layer 3: bias columns 9..11

    # ---- layer 4: BN(H) -> Conv1d(H -> 1) -> Sigmoid ------------------------
    # Three per-tap sublane reductions, output-side shift, scalar biases (SMEM).
    r0 = jnp.sum(col(12) * h, axis=0, keepdims=True)             # (1, BL)
    r1 = jnp.sum(col(13) * h, axis=0, keepdims=True)
    r2 = jnp.sum(col(14) * h, axis=0, keepdims=True)
    y = (nf_row * (pltpu.roll(r0, 1, axis=1) + sc4_ref[0])
         + (r1 + sc4_ref[1])
         + nl_row * (pltpu.roll(r2, BL - 1, axis=1) + sc4_ref[2]))
    o_ref[...] = jax.nn.sigmoid(y)                                # (1, BL)


def tcn1_forward(x, wmid, cols, sc4, hidden):
    """x: (B, L) float32.  Returns (B, L) float32."""
    B, L = x.shape
    BL = B * L
    x2 = x.reshape(1, BL).astype(jnp.float32)       # lane-dense input slab

    out = pl.pallas_call(
        functools.partial(_tcn1_kernel, seq_len=L, hidden=hidden),
        out_shape=jax.ShapeDtypeStruct((1, BL), jnp.float32),
        in_specs=[
            pl.BlockSpec(memory_space=pltpu.MemorySpace.VMEM),   # x slab
            pl.BlockSpec(memory_space=pltpu.MemorySpace.VMEM),   # weight slab
            pl.BlockSpec(memory_space=pltpu.MemorySpace.VMEM),   # column slab
            pl.BlockSpec(memory_space=pltpu.MemorySpace.SMEM),   # layer-4 scalars
        ],
        out_specs=pl.BlockSpec(memory_space=pltpu.MemorySpace.VMEM),
    )(x2, wmid, cols, sc4)
    return out.reshape(B, L)


# ---------------- deterministic parameter construction (synthetic) ----------
def init_bn(key, c):
    k1, k2, k3, k4 = jax.random.split(key, 4)
    gamma = jax.random.uniform(k1, (c,), minval=0.5, maxval=1.5)
    beta = jax.random.uniform(k2, (c,), minval=-0.1, maxval=0.1)
    mean = jax.random.uniform(k3, (c,), minval=-0.1, maxval=0.1)
    var = jax.random.uniform(k4, (c,), minval=0.5, maxval=1.5)
    return gamma, beta, mean, var


def init_conv(key, cin, cout, k=3):
    k1, k2 = jax.random.split(key)
    bound = 1.0 / ((cin * k) ** 0.5)
    w = jax.random.uniform(k1, (cout, cin, k), minval=-bound, maxval=bound)
    b = jax.random.uniform(k2, (cout,), minval=-bound, maxval=bound)
    return w, b


def fold_bn(gamma, beta, mean, var, eps=1e-5):
    s = gamma / jnp.sqrt(var + eps)
    t = beta - mean * s
    return s.astype(jnp.float32), t.astype(jnp.float32)


def make_packed_params(torch_layers, hidden):
    """Fold BN into the conv weights/biases and pack everything into:
         wmid : (2, 3H, H)  stacked tap-major mid-layer weights (scale folded)
         cols : (15, H, 1)  per-channel columns (tap weights + bias terms)
         sc4  : (3,)        layer-4 scalar per-tap bias terms (SMEM)
    """
    H = hidden
    cols = []

    # layer 1 (Cin = 1): scalar BN folded into per-output-channel tap weights.
    g, be, mu, va, w, b, _ = torch_layers[0]          # w: (H, 1, 3)
    s1, t1 = fold_bn(g, be, mu, va)                   # shape (1,)
    w1 = w[:, 0, :] * s1[0]                           # (H, 3), scale folded
    cols += [w1[:, 0], w1[:, 1], w1[:, 2],
             w[:, 0, 0] * t1[0],                      # tap-0 shift term
             w[:, 0, 1] * t1[0] + b,                  # centre shift + conv bias
             w[:, 0, 2] * t1[0]]                      # tap-2 shift term

    # layers 2, 3 (H -> H): stacked (3H, H) folded weights + bias columns.
    wmids = []
    for (g, be, mu, va, w, b, _) in torch_layers[1:3]:  # w: (H, H, 3)
        s, t = fold_bn(g, be, mu, va)                   # (H,)
        wmids.append(jnp.concatenate(
            [w[:, :, k] * s[None, :] for k in range(3)], axis=0))   # (3H, H)
        tk = [w[:, :, k] @ t for k in range(3)]          # (H,) each
        cols += [tk[0], tk[1] + b, tk[2]]

    # layer 4 (H -> 1): per-tap weight columns + three scalar bias terms.
    g, be, mu, va, w, b, _ = torch_layers[3]            # w: (1, H, 3)
    s4, t4 = fold_bn(g, be, mu, va)                     # (H,)
    w4 = w[0] * s4[:, None]                             # (H, 3), scale folded
    cols += [w4[:, 0], w4[:, 1], w4[:, 2]]
    sc4 = jnp.stack([jnp.dot(w[0, :, 0], t4),
                     jnp.dot(w[0, :, 1], t4) + b[0],
                     jnp.dot(w[0, :, 2], t4)]).astype(jnp.float32)   # (3,)

    wmid = jnp.stack(wmids, axis=0).astype(jnp.float32)              # (2, 3H, H)
    colmat = jnp.stack(cols, axis=0).astype(jnp.float32)             # (15, H)
    colmat = colmat.reshape(len(cols), H, 1)                         # (15, H, 1)
    return wmid, colmat, sc4


def ref_forward(x, torch_layers):
    """Pure-JAX reference matching PyTorch eval-mode semantics."""
    B, L = x.shape
    h = x.reshape(B, 1, L)
    for (gamma, beta, mean, var, w, b, relu) in torch_layers:
        hn = ((h - mean[None, :, None]) / jnp.sqrt(var[None, :, None] + 1e-5)
              * gamma[None, :, None] + beta[None, :, None])
        h = jax.lax.conv_general_dilated(
            hn, w, window_strides=(1,), padding=[(1, 1)],
            dimension_numbers=('NCH', 'OIH', 'NCH'))
        h = h + b[None, :, None]
        if relu:
            h = jnp.maximum(h, 0.0)
    return jax.nn.sigmoid(h).reshape(B, L)


if __name__ == "__main__":
    B, L, H = 2, 64, 32
    key = jax.random.PRNGKey(0)
    kx, k1, k2, k3, k4, k5, k6, k7, k8 = jax.random.split(key, 9)

    x = jax.random.normal(kx, (B, L), dtype=jnp.float32)

    # layer configs: (Cin, Cout, relu)
    cfgs = [(1, H, True), (H, H, True), (H, H, True), (H, 1, False)]
    bn_keys = [k1, k2, k3, k4]
    cv_keys = [k5, k6, k7, k8]

    torch_layers = []       # PyTorch-layout params (for the reference)
    for (cin, cout, relu), kb, kc in zip(cfgs, bn_keys, cv_keys):
        gamma, beta, mean, var = init_bn(kb, cin)
        w, b = init_conv(kc, cin, cout)          # w: (Cout, Cin, 3)
        torch_layers.append((gamma, beta, mean, var, w, b, relu))

    wmid, cols, sc4 = make_packed_params(torch_layers, H)

    out = tcn1_forward(x, wmid, cols, sc4, H)
    out = jax.block_until_ready(out)

    ref = ref_forward(x, torch_layers)
    err = float(jnp.max(jnp.abs(out - ref)))
    assert err < 1e-4, f"mismatch vs reference: {err}"
    print("KERNEL_OK")
</pallas_src>

<mosaic_0001>
module attributes {stable_mosaic.version = 11 : i64} {
  func.func @_tcn1_kernel(%arg0: memref<1x128xf32, #tpu.memory_space<vmem>>, %arg1: memref<2x96x32xf32, #tpu.memory_space<vmem>>, %arg2: memref<15x32x1xf32, #tpu.memory_space<vmem>>, %arg3: memref<3xf32, #tpu.memory_space<smem>>, %arg4: memref<1x128xf32, #tpu.memory_space<vmem>>) attributes {dimension_semantics = [], scalar_prefetch = 0 : i64, scratch_operands = 0 : i64, tpu.core_type = #tpu.core_type<tc>} {
    %0 = tpu.iota {dimensions = array<i32: 1>} : vector<1x128xi32>
    %c64_i32 = arith.constant 64 : i32
    %c0_i32 = arith.constant 0 : i32
    %1 = arith.cmpi eq, %c64_i32, %c0_i32 : i32
    %c1_i32 = arith.constant 1 : i32
    %2 = arith.select %1, %c1_i32, %c64_i32 : i32
    %3 = vector.broadcast %2 : i32 to vector<1x128xi32>
    %4 = arith.remsi %0, %3 : vector<1x128xi32>
    %c0_i32_0 = arith.constant 0 : i32
    %5 = vector.broadcast %c0_i32_0 : i32 to vector<1x128xi32>
    %6 = arith.cmpi ne, %4, %5 : vector<1x128xi32>
    %c0_i32_1 = arith.constant 0 : i32
    %7 = vector.broadcast %c0_i32_1 : i32 to vector<1x128xi32>
    %8 = arith.cmpi slt, %4, %7 : vector<1x128xi32>
    %c0_i32_2 = arith.constant 0 : i32
    %9 = arith.cmpi slt, %2, %c0_i32_2 : i32
    %10 = vector.broadcast %9 : i1 to vector<1x128xi1>
    %11 = vector.broadcast %10 : vector<1x128xi1> to vector<1x128xi1>
    %12 = arith.xori %8, %11 : vector<1x128xi1>
    %13 = arith.andi %12, %6 : vector<1x128xi1>
    %14 = vector.broadcast %2 : i32 to vector<1x128xi32>
    %15 = arith.addi %4, %14 : vector<1x128xi32>
    %16 = arith.select %13, %15, %4 : vector<1x128xi1>, vector<1x128xi32>
    %c0_i32_3 = arith.constant 0 : i32
    %17 = vector.broadcast %c0_i32_3 : i32 to vector<1x128xi32>
    %18 = arith.cmpi ne, %16, %17 : vector<1x128xi32>
    %19 = arith.extui %18 : vector<1x128xi1> to vector<1x128xi32>
    %20 = arith.sitofp %19 : vector<1x128xi32> to vector<1x128xf32>
    %c63_i32 = arith.constant 63 : i32
    %21 = vector.broadcast %c63_i32 : i32 to vector<1x128xi32>
    %22 = arith.cmpi ne, %16, %21 : vector<1x128xi32>
    %23 = arith.extui %22 : vector<1x128xi1> to vector<1x128xi32>
    %24 = arith.sitofp %23 : vector<1x128xi32> to vector<1x128xf32>
    %25 = vector.shape_cast %20 : vector<1x128xf32> to vector<1x128xf32>
    %26 = vector.broadcast %25 : vector<1x128xf32> to vector<32x128xf32>
    %27 = vector.shape_cast %24 : vector<1x128xf32> to vector<1x128xf32>
    %28 = vector.broadcast %27 : vector<1x128xf32> to vector<32x128xf32>
    %c0 = arith.constant 0 : index
    %c0_4 = arith.constant 0 : index
    %29 = vector.load %arg0[%c0, %c0_4] : memref<1x128xf32, #tpu.memory_space<vmem>>, vector<1x128xf32>
    %c1_i32_5 = arith.constant 1 : i32
    %30 = tpu.dynamic_rotate %29 by %c1_i32_5 dim 1 : vector<1x128xf32>, i32 -> vector<1x128xf32>
    %c127_i32 = arith.constant 127 : i32
    %31 = tpu.dynamic_rotate %29 by %c127_i32 dim 1 : vector<1x128xf32>, i32 -> vector<1x128xf32>
    %c0_6 = arith.constant 0 : index
    %c0_7 = arith.constant 0 : index
    %c0_8 = arith.constant 0 : index
    %32 = vector.load %arg2[%c0_6, %c0_7, %c0_8] : memref<15x32x1xf32, #tpu.memory_space<vmem>>, vector<1x32x1xf32>
    %33 = vector.shape_cast %32 : vector<1x32x1xf32> to vector<32x1xf32>
    %34 = vector.broadcast %33 : vector<32x1xf32> to vector<32x128xf32>
    %35 = vector.broadcast %30 : vector<1x128xf32> to vector<32x128xf32>
    %36 = arith.mulf %34, %35 : vector<32x128xf32>
    %c3 = arith.constant 3 : index
    %c0_9 = arith.constant 0 : index
    %c0_10 = arith.constant 0 : index
    %37 = vector.load %arg2[%c3, %c0_9, %c0_10] : memref<15x32x1xf32, #tpu.memory_space<vmem>>, vector<1x32x1xf32>
    %38 = vector.shape_cast %37 : vector<1x32x1xf32> to vector<32x1xf32>
    %39 = vector.broadcast %38 : vector<32x1xf32> to vector<32x128xf32>
    %40 = arith.addf %36, %39 : vector<32x128xf32>
    %41 = arith.mulf %26, %40 : vector<32x128xf32>
    %c1 = arith.constant 1 : index
    %c0_11 = arith.constant 0 : index
    %c0_12 = arith.constant 0 : index
    %42 = vector.load %arg2[%c1, %c0_11, %c0_12] : memref<15x32x1xf32, #tpu.memory_space<vmem>>, vector<1x32x1xf32>
    %43 = vector.shape_cast %42 : vector<1x32x1xf32> to vector<32x1xf32>
    %44 = vector.broadcast %43 : vector<32x1xf32> to vector<32x128xf32>
    %45 = vector.broadcast %29 : vector<1x128xf32> to vector<32x128xf32>
    %46 = arith.mulf %44, %45 : vector<32x128xf32>
    %c4 = arith.constant 4 : index
    %c0_13 = arith.constant 0 : index
    %c0_14 = arith.constant 0 : index
    %47 = vector.load %arg2[%c4, %c0_13, %c0_14] : memref<15x32x1xf32, #tpu.memory_space<vmem>>, vector<1x32x1xf32>
    %48 = vector.shape_cast %47 : vector<1x32x1xf32> to vector<32x1xf32>
    %49 = vector.broadcast %48 : vector<32x1xf32> to vector<32x128xf32>
    %50 = arith.addf %46, %49 : vector<32x128xf32>
    %51 = arith.addf %41, %50 : vector<32x128xf32>
    %c2 = arith.constant 2 : index
    %c0_15 = arith.constant 0 : index
    %c0_16 = arith.constant 0 : index
    %52 = vector.load %arg2[%c2, %c0_15, %c0_16] : memref<15x32x1xf32, #tpu.memory_space<vmem>>, vector<1x32x1xf32>
    %53 = vector.shape_cast %52 : vector<1x32x1xf32> to vector<32x1xf32>
    %54 = vector.broadcast %53 : vector<32x1xf32> to vector<32x128xf32>
    %55 = vector.broadcast %31 : vector<1x128xf32> to vector<32x128xf32>
    %56 = arith.mulf %54, %55 : vector<32x128xf32>
    %c5 = arith.constant 5 : index
    %c0_17 = arith.constant 0 : index
    %c0_18 = arith.constant 0 : index
    %57 = vector.load %arg2[%c5, %c0_17, %c0_18] : memref<15x32x1xf32, #tpu.memory_space<vmem>>, vector<1x32x1xf32>
    %58 = vector.shape_cast %57 : vector<1x32x1xf32> to vector<32x1xf32>
    %59 = vector.broadcast %58 : vector<32x1xf32> to vector<32x128xf32>
    %60 = arith.addf %56, %59 : vector<32x128xf32>
    %61 = arith.mulf %28, %60 : vector<32x128xf32>
    %62 = arith.addf %51, %61 : vector<32x128xf32>
    %cst = arith.constant 0.000000e+00 : f32
    %63 = vector.broadcast %cst : f32 to vector<32x128xf32>
    %64 = arith.maximumf %62, %63 : vector<32x128xf32>
    %c0_19 = arith.constant 0 : index
    %c0_20 = arith.constant 0 : index
    %c0_21 = arith.constant 0 : index
    %65 = vector.load %arg1[%c0_19, %c0_20, %c0_21] : memref<2x96x32xf32, #tpu.memory_space<vmem>>, vector<1x96x32xf32>
    %66 = vector.shape_cast %65 : vector<1x96x32xf32> to vector<96x32xf32>
    %cst_22 = arith.constant dense<0.000000e+00> : vector<96x128xf32>
    %67 = tpu.matmul %66, %64, %cst_22 {dimension_numbers = #tpu.dot_dimension_numbers<[1], [0], [0], [1], [0, 0, 1, 1], [], []>} : vector<96x32xf32>, vector<32x128xf32>, vector<96x128xf32> -> vector<96x128xf32>
    %68 = vector.extract_strided_slice %67 {offsets = [0, 0], sizes = [32, 128], strides = [1, 1]} : vector<96x128xf32> to vector<32x128xf32>
    %c1_i32_23 = arith.constant 1 : i32
    %69 = tpu.dynamic_rotate %68 by %c1_i32_23 dim 1 : vector<32x128xf32>, i32 -> vector<32x128xf32>
    %c6 = arith.constant 6 : index
    %c0_24 = arith.constant 0 : index
    %c0_25 = arith.constant 0 : index
    %70 = vector.load %arg2[%c6, %c0_24, %c0_25] : memref<15x32x1xf32, #tpu.memory_space<vmem>>, vector<1x32x1xf32>
    %71 = vector.shape_cast %70 : vector<1x32x1xf32> to vector<32x1xf32>
    %72 = vector.broadcast %71 : vector<32x1xf32> to vector<32x128xf32>
    %73 = arith.addf %69, %72 : vector<32x128xf32>
    %74 = arith.mulf %26, %73 : vector<32x128xf32>
    %75 = vector.extract_strided_slice %67 {offsets = [32, 0], sizes = [32, 128], strides = [1, 1]} : vector<96x128xf32> to vector<32x128xf32>
    %c7 = arith.constant 7 : index
    %c0_26 = arith.constant 0 : index
    %c0_27 = arith.constant 0 : index
    %76 = vector.load %arg2[%c7, %c0_26, %c0_27] : memref<15x32x1xf32, #tpu.memory_space<vmem>>, vector<1x32x1xf32>
    %77 = vector.shape_cast %76 : vector<1x32x1xf32> to vector<32x1xf32>
    %78 = vector.broadcast %77 : vector<32x1xf32> to vector<32x128xf32>
    %79 = arith.addf %75, %78 : vector<32x128xf32>
    %80 = arith.addf %74, %79 : vector<32x128xf32>
    %81 = vector.extract_strided_slice %67 {offsets = [64, 0], sizes = [32, 128], strides = [1, 1]} : vector<96x128xf32> to vector<32x128xf32>
    %c127_i32_28 = arith.constant 127 : i32
    %82 = tpu.dynamic_rotate %81 by %c127_i32_28 dim 1 : vector<32x128xf32>, i32 -> vector<32x128xf32>
    %c8 = arith.constant 8 : index
    %c0_29 = arith.constant 0 : index
    %c0_30 = arith.constant 0 : index
    %83 = vector.load %arg2[%c8, %c0_29, %c0_30] : memref<15x32x1xf32, #tpu.memory_space<vmem>>, vector<1x32x1xf32>
    %84 = vector.shape_cast %83 : vector<1x32x1xf32> to vector<32x1xf32>
    %85 = vector.broadcast %84 : vector<32x1xf32> to vector<32x128xf32>
    %86 = arith.addf %82, %85 : vector<32x128xf32>
    %87 = arith.mulf %28, %86 : vector<32x128xf32>
    %88 = arith.addf %80, %87 : vector<32x128xf32>
    %cst_31 = arith.constant 0.000000e+00 : f32
    %89 = vector.broadcast %cst_31 : f32 to vector<32x128xf32>
    %90 = arith.maximumf %88, %89 : vector<32x128xf32>
    %c1_32 = arith.constant 1 : index
    %c0_33 = arith.constant 0 : index
    %c0_34 = arith.constant 0 : index
    %91 = vector.load %arg1[%c1_32, %c0_33, %c0_34] : memref<2x96x32xf32, #tpu.memory_space<vmem>>, vector<1x96x32xf32>
    %92 = vector.shape_cast %91 : vector<1x96x32xf32> to vector<96x32xf32>
    %cst_35 = arith.constant dense<0.000000e+00> : vector<96x128xf32>
    %93 = tpu.matmul %92, %90, %cst_35 {dimension_numbers = #tpu.dot_dimension_numbers<[1], [0], [0], [1], [0, 0, 1, 1], [], []>} : vector<96x32xf32>, vector<32x128xf32>, vector<96x128xf32> -> vector<96x128xf32>
    %94 = vector.extract_strided_slice %93 {offsets = [0, 0], sizes = [32, 128], strides = [1, 1]} : vector<96x128xf32> to vector<32x128xf32>
    %c1_i32_36 = arith.constant 1 : i32
    %95 = tpu.dynamic_rotate %94 by %c1_i32_36 dim 1 : vector<32x128xf32>, i32 -> vector<32x128xf32>
    %c9 = arith.constant 9 : index
    %c0_37 = arith.constant 0 : index
    %c0_38 = arith.constant 0 : index
    %96 = vector.load %arg2[%c9, %c0_37, %c0_38] : memref<15x32x1xf32, #tpu.memory_space<vmem>>, vector<1x32x1xf32>
    %97 = vector.shape_cast %96 : vector<1x32x1xf32> to vector<32x1xf32>
    %98 = vector.broadcast %97 : vector<32x1xf32> to vector<32x128xf32>
    %99 = arith.addf %95, %98 : vector<32x128xf32>
    %100 = arith.mulf %26, %99 : vector<32x128xf32>
    %101 = vector.extract_strided_slice %93 {offsets = [32, 0], sizes = [32, 128], strides = [1, 1]} : vector<96x128xf32> to vector<32x128xf32>
    %c10 = arith.constant 10 : index
    %c0_39 = arith.constant 0 : index
    %c0_40 = arith.constant 0 : index
    %102 = vector.load %arg2[%c10, %c0_39, %c0_40] : memref<15x32x1xf32, #tpu.memory_space<vmem>>, vector<1x32x1xf32>
    %103 = vector.shape_cast %102 : vector<1x32x1xf32> to vector<32x1xf32>
    %104 = vector.broadcast %103 : vector<32x1xf32> to vector<32x128xf32>
    %105 = arith.addf %101, %104 : vector<32x128xf32>
    %106 = arith.addf %100, %105 : vector<32x128xf32>
    %107 = vector.extract_strided_slice %93 {offsets = [64, 0], sizes = [32, 128], strides = [1, 1]} : vector<96x128xf32> to vector<32x128xf32>
    %c127_i32_41 = arith.constant 127 : i32
    %108 = tpu.dynamic_rotate %107 by %c127_i32_41 dim 1 : vector<32x128xf32>, i32 -> vector<32x128xf32>
    %c11 = arith.constant 11 : index
    %c0_42 = arith.constant 0 : index
    %c0_43 = arith.constant 0 : index
    %109 = vector.load %arg2[%c11, %c0_42, %c0_43] : memref<15x32x1xf32, #tpu.memory_space<vmem>>, vector<1x32x1xf32>
    %110 = vector.shape_cast %109 : vector<1x32x1xf32> to vector<32x1xf32>
    %111 = vector.broadcast %110 : vector<32x1xf32> to vector<32x128xf32>
    %112 = arith.addf %108, %111 : vector<32x128xf32>
    %113 = arith.mulf %28, %112 : vector<32x128xf32>
    %114 = arith.addf %106, %113 : vector<32x128xf32>
    %cst_44 = arith.constant 0.000000e+00 : f32
    %115 = vector.broadcast %cst_44 : f32 to vector<32x128xf32>
    %116 = arith.maximumf %114, %115 : vector<32x128xf32>
    %c12 = arith.constant 12 : index
    %c0_45 = arith.constant 0 : index
    %c0_46 = arith.constant 0 : index
    %117 = vector.load %arg2[%c12, %c0_45, %c0_46] : memref<15x32x1xf32, #tpu.memory_space<vmem>>, vector<1x32x1xf32>
    %118 = vector.shape_cast %117 : vector<1x32x1xf32> to vector<32x1xf32>
    %119 = vector.broadcast %118 : vector<32x1xf32> to vector<32x128xf32>
    %120 = arith.mulf %119, %116 : vector<32x128xf32>
    %cst_47 = arith.constant dense<0.000000e+00> : vector<128xf32>
    %121 = vector.multi_reduction <add>, %120, %cst_47 [0] : vector<32x128xf32> to vector<128xf32>
    %122 = vector.shape_cast %121 : vector<128xf32> to vector<1x128xf32>
    %c13 = arith.constant 13 : index
    %c0_48 = arith.constant 0 : index
    %c0_49 = arith.constant 0 : index
    %123 = vector.load %arg2[%c13, %c0_48, %c0_49] : memref<15x32x1xf32, #tpu.memory_space<vmem>>, vector<1x32x1xf32>
    %124 = vector.shape_cast %123 : vector<1x32x1xf32> to vector<32x1xf32>
    %125 = vector.broadcast %124 : vector<32x1xf32> to vector<32x128xf32>
    %126 = arith.mulf %125, %116 : vector<32x128xf32>
    %cst_50 = arith.constant dense<0.000000e+00> : vector<128xf32>
    %127 = vector.multi_reduction <add>, %126, %cst_50 [0] : vector<32x128xf32> to vector<128xf32>
    %128 = vector.shape_cast %127 : vector<128xf32> to vector<1x128xf32>
    %c14 = arith.constant 14 : index
    %c0_51 = arith.constant 0 : index
    %c0_52 = arith.constant 0 : index
    %129 = vector.load %arg2[%c14, %c0_51, %c0_52] : memref<15x32x1xf32, #tpu.memory_space<vmem>>, vector<1x32x1xf32>
    %130 = vector.shape_cast %129 : vector<1x32x1xf32> to vector<32x1xf32>
    %131 = vector.broadcast %130 : vector<32x1xf32> to vector<32x128xf32>
    %132 = arith.mulf %131, %116 : vector<32x128xf32>
    %cst_53 = arith.constant dense<0.000000e+00> : vector<128xf32>
    %133 = vector.multi_reduction <add>, %132, %cst_53 [0] : vector<32x128xf32> to vector<128xf32>
    %134 = vector.shape_cast %133 : vector<128xf32> to vector<1x128xf32>
    %c1_i32_54 = arith.constant 1 : i32
    %135 = tpu.dynamic_rotate %122 by %c1_i32_54 dim 1 : vector<1x128xf32>, i32 -> vector<1x128xf32>
    %c0_55 = arith.constant 0 : index
    %136 = memref.load %arg3[%c0_55] : memref<3xf32, #tpu.memory_space<smem>>
    %137 = vector.broadcast %136 : f32 to vector<1x128xf32>
    %138 = arith.addf %135, %137 : vector<1x128xf32>
    %139 = arith.mulf %20, %138 : vector<1x128xf32>
    %c1_56 = arith.constant 1 : index
    %140 = memref.load %arg3[%c1_56] : memref<3xf32, #tpu.memory_space<smem>>
    %141 = vector.broadcast %140 : f32 to vector<1x128xf32>
    %142 = arith.addf %128, %141 : vector<1x128xf32>
    %143 = arith.addf %139, %142 : vector<1x128xf32>
    %c127_i32_57 = arith.constant 127 : i32
    %144 = tpu.dynamic_rotate %134 by %c127_i32_57 dim 1 : vector<1x128xf32>, i32 -> vector<1x128xf32>
    %c2_58 = arith.constant 2 : index
    %145 = memref.load %arg3[%c2_58] : memref<3xf32, #tpu.memory_space<smem>>
    %146 = vector.broadcast %145 : f32 to vector<1x128xf32>
    %147 = arith.addf %144, %146 : vector<1x128xf32>
    %148 = arith.mulf %24, %147 : vector<1x128xf32>
    %149 = arith.addf %143, %148 : vector<1x128xf32>
    %150 = arith.negf %149 : vector<1x128xf32>
    %151 = math.exp %150 : vector<1x128xf32>
    %cst_59 = arith.constant 1.000000e+00 : f32
    %152 = vector.broadcast %cst_59 : f32 to vector<1x128xf32>
    %153 = arith.addf %152, %151 : vector<1x128xf32>
    %154 = arith.divf %152, %153 : vector<1x128xf32>
    %c0_60 = arith.constant 0 : index
    %c0_61 = arith.constant 0 : index
    %155 = vector.load %arg4[%c0_60, %c0_61] : memref<1x128xf32, #tpu.memory_space<vmem>>, vector<1x128xf32>
    tpu.vector_store %arg4[%c0_60, %c0_61], %154 {strides = array<i32>} : memref<1x128xf32, #tpu.memory_space<vmem>>, vector<1x128xf32>,
    return
  }
}

</mosaic_0001>

<bundles_post_ra>
// kernel: tpu_custom_call.1
= control target key start
LH: loop header
LB: loop body
LE: loop exit
PB: predicated region body
PF: predicated region fallthrough
CT: control target
= control target key end

     0   :  { %9 = vsyncpa [#allocation4], 0  ;;  %s1655_s0 = inlined_call_operand.vmem [shape: f32[1,128], index: 0, kind: input, shape index: {}]   ;;  %s1656_s1 = inlined_call_operand.vmem [shape: f32[2,96,32], index: 1, kind: input, shape index: {}]   ;;  %s1657_s2 = inlined_call_operand.vmem [shape: f32[15,32,1], index: 2, kind: input, shape index: {}]   ;;  %s1658_s3 = inlined_call_operand.vmem [shape: f32[3], index: 3, kind: input, shape index: {}]   ;;  %s1659_s4 = inlined_call_operand.hbm [shape: f32[1,128], index: 4, kind: output, shape index: {}]  }
   0x1   :  { %10 = vsyncpa [#allocation3], 0  ;;  %s23_s17 = sshll.u32 %s1658_s3, 4  ;;  %s24_s17 = int_to_ptr.vmem [resolvable:$true] %s23_s17 }
   0x2   :  { %s1219_s18 = scalar_lea.vmem %s24_s17, 16  ;;  %p1224_p1 = scmp.lt.s32.totalorder %s24_s17, %s24_s17 }
   0x3   :  { %p1220_p0 = scmp.ne.s32.totalorder %s24_s17, %s1219_s18  ;;  %p1225_p2 = scmp.lt.s32.totalorder %s1219_s18, %s1219_s18 }
   0x5   :  { %p1226_p3 = por %p1225_p2, %p1224_p1 }
   0x7   :  { %p1227_p4 = pnand %p1226_p3, %p1220_p0 }
   0x9   :  { %1230 = shalt.err (!%p1227_p4)
}
   0xa   :  { %s1257_s19 = smov [#allocation2]  }
   0xb   :  { %26 = dma.vmem_to_smem %s24_s17, 16, %s1257_s19, [#allocation4]  }
   0xc   :  { %1253 = dma.done.wait [#allocation4], 16  }
   0xd   :  { %1254 = vsyncadd [#allocation4], 4294967280 }
   0xe   :  { %30 = sfence }
   0xf   :  { %v1012_v0 = vld [vmem:[%s1657_s2 + $0x60] sm:$0xff]  ;;  %v1258_v2 = vmov 0   ;;  %v1013_v3 = vld [vmem:[%s1657_s2 + $0x68] sm:$0xff]  ;;  %v59_v9 = vld [vmem:[%s1657_s2 + $0x18] sm:$0xff]  ;;  %s1259_s24 = smov 1   ;;  %s1260_s8 = smov 127   ;;  %v31_v49 = vlaneseq }
  0x10   :  { %v56_v1 = vld [vmem:[%s1657_s2] sm:$0xff]  ;;  %1214 = vset.pattern.permute.xlu1 %v1258_v2  ;;  %1213 = vset.pattern.permute.xlu0 %v1258_v2  ;;  %v57_v4 = vld [vmem:[%s1657_s2 + $0x8] sm:$0xff]  ;;  %v58_v10 = vld [vmem:[%s1657_s2 + $0x10] sm:$0xff]  ;;  %vm275_vm0 = vcmask 261120   ;;  %s1104_s5 = sld [smem:[#allocation2 + $0x1]]  ;;  %s1105_s6 = sld [smem:[#allocation2 + $0x2]] }
  0x11   :  { %95 = vperm.xlu1 %1214, %v1012_v0   ;;  %62 = vperm.xlu0 %1213, %v56_v1   ;;  %v1017_v5 = vld [vmem:[%s1657_s2 + $0x28] sm:$0xff]  ;;  %v1016_v6 = vld [vmem:[%s1657_s2 + $0x20] sm:$0xff]  ;;  %v1014_v15 = vld [vmem:[%s1657_s2 + $0x70] sm:$0xff]  ;;  %v81_v52 = vshrl.u32 %v31_v49, 7  ;;  %v32_v55 = vand.u32 127, %v31_v49 }
  0x12   :  { %v1025_v7 = vld [vmem:[%s1657_s2 + $0x48] sm:$0xff]  ;;  %v1024_v8 = vld [vmem:[%s1657_s2 + $0x40] sm:$0xff]  ;;  %v1018_v17 = vld [vmem:[%s1657_s2 + $0x30] sm:$0xff] }
  0x13   :  { %v1021_v11 = vld [vmem:[%s1657_s2 + $0x88] sm:$0xff]  ;;  %v1020_v12 = vld [vmem:[%s1657_s2 + $0x80] sm:$0xff]  ;;  %v1015_v18 = vld [vmem:[%s1657_s2 + $0x78] sm:$0xff]  ;;  %v82_v56 = vsub.s32 0, %v81_v52  ;;  %v37_v60 = vand.u32 63, %v32_v55 }
  0x14   :  { %v1029_v13 = vld [vmem:[%s1657_s2 + $0xa8] sm:$0xff]  ;;  %v1028_v14 = vld [vmem:[%s1657_s2 + $0xa0] sm:$0xff]  ;;  %v1026_v19 = vld [vmem:[%s1657_s2 + $0x50] sm:$0xff] }
  0x15   :  { %100 = vperm.xlu1 %1214, %v1013_v3   ;;  %67 = vperm.xlu0 %1213, %v57_v4   ;;  %v1339_v16 = vld [vmem:[%s1655_s0] sm:$0x1]  ;;  %v1019_v20 = vld [vmem:[%s1657_s2 + $0x38] sm:$0xff]  ;;  %v1022_v23 = vld [vmem:[%s1657_s2 + $0x90] sm:$0xff]  ;;  %vm45_vm1 = vcmp.ne.s32.totalorder %v37_v60, 0  ;;  %vm48_vm2 = vcmp.ne.s32.totalorder %v37_v60, 63 }
  0x16   :  { %v1027_v21 = vld [vmem:[%s1657_s2 + $0x58] sm:$0xff]  ;;  %v1030_v25 = vld [vmem:[%s1657_s2 + $0xb0] sm:$0xff]  ;;  %v1045_v26 = vld [vmem:[%s1657_s2 + $0xc8] sm:$0xff]  ;;  %v150_v3 = vrot.slane %v1339_v16, %v82_v56 }
  0x17   :  { %v1023_v22 = vld [vmem:[%s1657_s2 + $0x98] sm:$0xff]  ;;  %v1044_v27 = vld [vmem:[%s1657_s2 + $0xc0] sm:$0xff]  ;;  %v1049_v28 = vld [vmem:[%s1657_s2 + $0xe8] sm:$0xff] }
  0x18   :  { %v1031_v24 = vld [vmem:[%s1657_s2 + $0xb8] sm:$0xff]  ;;  %v1048_v29 = vld [vmem:[%s1657_s2 + $0xe0] sm:$0xff]  ;;  %v1053_v30 = vld [vmem:[%s1657_s2 + $0x108] sm:$0xff] }
  0x19   :  { %133 = vperm.xlu1 %1214, %v1017_v5   ;;  %128 = vperm.xlu0 %1213, %v1016_v6   ;;  %v1052_v31 = vld [vmem:[%s1657_s2 + $0x100] sm:$0xff]  ;;  %v1047_v33 = vld [vmem:[%s1657_s2 + $0xd8] sm:$0xff]  ;;  %v1046_v34 = vld [vmem:[%s1657_s2 + $0xd0] sm:$0xff]  ;;  %v1261_v6 = vmov 0.0  }
  0x1a   :  { %v263_v32 = vld [vmem:[%s1656_s1] sm:$0xff]  ;;  %v1051_v35 = vld [vmem:[%s1657_s2 + $0xf8] sm:$0xff]  ;;  %v1050_v36 = vld [vmem:[%s1657_s2 + $0xf0] sm:$0xff] }
  0x1b   :  { %1147 = vmatprep.mubr.msk.f32.mxu0 %vm275_vm0, %v263_v32  ;;  %v1055_v37 = vld [vmem:[%s1657_s2 + $0x118] sm:$0xff]  ;;  %v1054_v38 = vld [vmem:[%s1657_s2 + $0x110] sm:$0xff] }
  0x1c   :  { %v266_v60 = vld [vmem:[%s1656_s1 + $0x18] sm:$0xff] }
  0x1d   :  { %201 = vperm.xlu1 %1214, %v1025_v7   ;;  %196 = vperm.xlu0 %1213, %v1024_v8   ;;  %v1413_v7 = vsel %vm45_vm1, 1.0, %v1261_v6 }
  0x21   :  { %77 = vperm.xlu1 %1214, %v59_v9   ;;  %72 = vperm.xlu0 %1213, %v58_v10  }
  0x25   :  { %168 = vperm.xlu1 %1214, %v1021_v11   ;;  %163 = vperm.xlu0 %1213, %v1020_v12  }
  0x29   :  { %234 = vperm.xlu1 %1214, %v1029_v13   ;;  %229 = vperm.xlu0 %1213, %v1028_v14  }
  0x2d   :  { %105 = vperm.xlu1 %1214, %v1014_v15   ;;  %52 = vrot.lane.b32.xlu0 %v1339_v16, %s1259_s24  ;;  %v1415_v15 = vsel %vm48_vm2, 1.0, %v1261_v6 }
  0x31   :  { %138 = vperm.xlu1 %1214, %v1018_v17   ;;  %110 = vperm.xlu0 %1213, %v1015_v18  }
  0x35   :  { %206 = vperm.xlu1 %1214, %v1026_v19   ;;  %143 = vperm.xlu0 %1213, %v1019_v20  }
  0x39   :  { %54 = vrot.lane.b32.xlu1 %v1339_v16, %s1260_s8  ;;  %211 = vperm.xlu0 %1213, %v1027_v21  }
  0x3d   :  { %178 = vperm.xlu1 %1214, %v1023_v22   ;;  %173 = vperm.xlu0 %1213, %v1022_v23  }
  0x41   :  { %244 = vperm.xlu1 %1214, %v1031_v24   ;;  %239 = vperm.xlu0 %1213, %v1030_v25  }
  0x45   :  { %457 = vperm.xlu1 %1214, %v1045_v26   ;;  %452 = vperm.xlu0 %1213, %v1044_v27  }
  0x49   :  { %490 = vperm.xlu1 %1214, %v1049_v28   ;;  %485 = vperm.xlu0 %1213, %v1048_v29  }
  0x4d   :  { %531 = vperm.xlu1 %1214, %v1053_v30   ;;  %526 = vperm.xlu0 %1213, %v1052_v31  }
  0x51   :  { %467 = vperm.xlu1 %1214, %v1047_v33   ;;  %462 = vperm.xlu0 %1213, %v1046_v34  }
  0x55   :  { %500 = vperm.xlu1 %1214, %v1051_v35   ;;  %495 = vperm.xlu0 %1213, %v1050_v36  }
  0x59   :  { %541 = vperm.xlu1 %1214, %v1055_v37   ;;  %536 = vperm.xlu0 %1213, %v1054_v38  }
  0x90   :  { %v96_v39 = vpop.permute.xlu1 %95  ;;  %v63_v40 = vpop.permute.xlu0 %62 }
  0x94   :  { %v101_v41 = vpop.permute.xlu1 %100  ;;  %v68_v42 = vpop.permute.xlu0 %67 }
  0x98   :  { %v134_v43 = vpop.permute.xlu1 %133  ;;  %v129_v44 = vpop.permute.xlu0 %128 }
  0x99   :  { %v153_v12 = vmul.f32 %v150_v3, %v134_v43  ;;  %v152_v13 = vmul.f32 %v150_v3, %v129_v44 }
  0x9c   :  { %v202_v45 = vpop.permute.xlu1 %201  ;;  %v197_v46 = vpop.permute.xlu0 %196 }
  0xa0   :  { %v78_v47 = vpop.permute.xlu1 %77  ;;  %v73_v48 = vpop.permute.xlu0 %72 }
  0xa4   :  { %v169_v50 = vpop.permute.xlu1 %168  ;;  %v164_v51 = vpop.permute.xlu0 %163 }
  0xa5   :  { %v182_v16 = vadd.f32 %v169_v50, %v153_v12  ;;  %v181_v19 = vadd.f32 %v164_v51, %v152_v13 }
  0xa8   :  { %v235_v53 = vpop.permute.xlu1 %234  ;;  %v230_v54 = vpop.permute.xlu0 %229 }
  0xac   :  { %v106_v57 = vpop.permute.xlu1 %105  ;;  %v53_v58 = vpop.permute.xlu0 %52 }
  0xad   :  { %v83_v59 = vrot.slane %v53_v58, %v82_v56  ;;  %v264_v58 = vld [vmem:[%s1656_s1 + $0x8] sm:$0xff] }
  0xaf   :  { %v84_v63 = vmul.f32 %v83_v59, %v63_v40  ;;  %v85_v0 = vmul.f32 %v83_v59, %v68_v42  ;;  %v87_v8 = vmul.f32 %v83_v59, %v78_v47  ;;  %v86_v11 = vmul.f32 %v83_v59, %v73_v48  ;;  %v265_v59 = vld [vmem:[%s1656_s1 + $0x10] sm:$0xff] }
  0xb0   :  { %v139_v61 = vpop.permute.xlu1 %138  ;;  %v111_v62 = vpop.permute.xlu0 %110 }
  0xb1   :  { %v113_v4 = vadd.f32 %v96_v39, %v84_v63  ;;  %v114_v5 = vadd.f32 %v101_v41, %v85_v0  ;;  %v154_v22 = vmul.f32 %v150_v3, %v139_v61  ;;  %v116_v23 = vadd.f32 %v111_v62, %v87_v8  ;;  %v267_v61 = vld [vmem:[%s1656_s1 + $0x20] sm:$0xff]  ;;  %v268_v62 = vld [vmem:[%s1656_s1 + $0x28] sm:$0xff]  ;;  %v269_v63 = vld [vmem:[%s1656_s1 + $0x30] sm:$0xff] }
  0xb2   :  { %v115_v27 = vadd.f32 %v106_v57, %v86_v11  ;;  %v270_v0 = vld [vmem:[%s1656_s1 + $0x38] sm:$0xff] }
  0xb3   :  { %v117_v17 = vmul.f32 %v1413_v7, %v113_v4  ;;  %v118_v18 = vmul.f32 %v1413_v7, %v114_v5  ;;  %v120_v38 = vmul.f32 %v1413_v7, %v116_v23  ;;  %v274_v4 = vld [vmem:[%s1656_s1 + $0x58] sm:$0xff]  ;;  %v1082_v23 = vld [vmem:[%s1657_s2 + $0x130] sm:$0xff] }
  0xb4   :  { %v207_v1 = vpop.permute.xlu1 %206  ;;  %v144_v2 = vpop.permute.xlu0 %143  ;;  %v119_v39 = vmul.f32 %v1413_v7, %v115_v27  ;;  %v1089_v27 = vld [vmem:[%s1657_s2 + $0x168] sm:$0xff] }
  0xb5   :  { %v155_v24 = vmul.f32 %v150_v3, %v144_v2  ;;  %v185_v32 = vadd.f32 %v181_v19, %v117_v17  ;;  %v186_v33 = vadd.f32 %v182_v16, %v118_v18  ;;  %v272_v2 = vld [vmem:[%s1656_s1 + $0x48] sm:$0xff]  ;;  %v273_v3 = vld [vmem:[%s1656_s1 + $0x50] sm:$0xff]  ;;  %v1056_v16 = vld [vmem:[%s1656_s1 + $0x60] sm:$0xff] }
  0xb6   :  { %1173 = vmatprep.mubr.msk.f32.mxu1 %vm275_vm0, %v1056_v16 }
  0xb8   :  { %v55_v9 = vpop.permute.xlu1 %54  ;;  %v212_v10 = vpop.permute.xlu0 %211 }
  0xb9   :  { %v217_v14 = vrot.slane %v55_v9, %v82_v56 }
  0xbb   :  { %v218_v20 = vmul.f32 %v217_v14, %v197_v46  ;;  %v219_v21 = vmul.f32 %v217_v14, %v202_v45  ;;  %v221_v34 = vmul.f32 %v217_v14, %v212_v10  ;;  %v220_v35 = vmul.f32 %v217_v14, %v207_v1  ;;  %v271_v1 = vld [vmem:[%s1656_s1 + $0x40] sm:$0xff] }
  0xbc   :  { %v179_v25 = vpop.permute.xlu1 %178  ;;  %v174_v26 = vpop.permute.xlu0 %173 }
  0xbd   :  { %v247_v28 = vadd.f32 %v230_v54, %v218_v20  ;;  %v248_v29 = vadd.f32 %v235_v53, %v219_v21  ;;  %v184_v30 = vadd.f32 %v179_v25, %v155_v24  ;;  %v183_v31 = vadd.f32 %v174_v26, %v154_v22  ;;  %v1081_v20 = vld [vmem:[%s1657_s2 + $0x128] sm:$0xff]  ;;  %v1080_v21 = vld [vmem:[%s1657_s2 + $0x120] sm:$0xff]  ;;  %v1083_v26 = vld [vmem:[%s1657_s2 + $0x138] sm:$0xff] }
  0xbe   :  { %v1084_v22 = vld [vmem:[%s1657_s2 + $0x140] sm:$0xff]  ;;  %v1085_v25 = vld [vmem:[%s1657_s2 + $0x148] sm:$0xff] }
  0xbf   :  { %v251_v36 = vmul.f32 %v1415_v15, %v247_v28  ;;  %v252_v37 = vmul.f32 %v1415_v15, %v248_v29  ;;  %v188_v46 = vadd.f32 %v184_v30, %v120_v38  ;;  %v187_v47 = vadd.f32 %v183_v31, %v119_v39  ;;  %v1088_v24 = vld [vmem:[%s1657_s2 + $0x160] sm:$0xff]  ;;  %v1090_v28 = vld [vmem:[%s1657_s2 + $0x170] sm:$0xff]  ;;  %v1091_v30 = vld [vmem:[%s1657_s2 + $0x178] sm:$0xff] }
  0xc0   :  { %v245_v40 = vpop.permute.xlu1 %244  ;;  %v240_v41 = vpop.permute.xlu0 %239  ;;  %v1086_v29 = vld [vmem:[%s1657_s2 + $0x150] sm:$0xff]  ;;  %v1087_v31 = vld [vmem:[%s1657_s2 + $0x158] sm:$0xff] }
  0xc1   :  { %v250_v42 = vadd.f32 %v245_v40, %v221_v34  ;;  %v249_v43 = vadd.f32 %v240_v41, %v220_v35  ;;  %v255_v44 = vadd.f32 %v251_v36, %v185_v32  ;;  %v256_v45 = vadd.f32 %v252_v37, %v186_v33  ;;  %v1092_v32 = vld [vmem:[%s1657_s2 + $0x180] sm:$0xff]  ;;  %v1093_v33 = vld [vmem:[%s1657_s2 + $0x188] sm:$0xff]  ;;  %v1094_v34 = vld [vmem:[%s1657_s2 + $0x190] sm:$0xff] }
  0xc2   :  { %v1100_v35 = vld [vmem:[%s1657_s2 + $0x1c0] sm:$0xff]  ;;  %v1101_v36 = vld [vmem:[%s1657_s2 + $0x1c8] sm:$0xff] }
  0xc3   :  { %v254_v48 = vmul.f32 %v1415_v15, %v250_v42  ;;  %v253_v49 = vmul.f32 %v1415_v15, %v249_v43  ;;  %v259_v50 = vmax.f32 %v255_v44, 0.0  ;;  %v260_v51 = vmax.f32 %v256_v45, 0.0 }
  0xc4   :  { %v458_v37 = vpop.permute.xlu1 %457  ;;  %v453_v38 = vpop.permute.xlu0 %452 }
  0xc5   :  { %v258_v52 = vadd.f32 %v254_v48, %v188_v46  ;;  %v257_v53 = vadd.f32 %v253_v49, %v187_v47  ;;  %v1191_v54 = vpack.c.bf16 %v260_v51, %v259_v50 }
  0xc7   :  { %v262_v55 = vmax.f32 %v258_v52, 0.0  ;;  %v261_v56 = vmax.f32 %v257_v53, 0.0  ;;  %1192 = vmatprep.subr.bf16.mxu0 %v1191_v54 }
  0xc8   :  { %1194 = vmatpush3.bf16.msra.mxu0 %v1191_v54  ;;  %v491_v39 = vpop.permute.xlu1 %490  ;;  %v486_v40 = vpop.permute.xlu0 %485 }
  0xc9   :  { %v1195_v57 = vpack.c.bf16 %v262_v55, %v261_v56 }
  0xcb   :  { %1196 = vmatprep.subr.bf16.mxu0 %v1195_v57 }
  0xcc   :  { %1198 = vmatpush3.bf16.msra.mxu0 %v1195_v57  ;;  %v532_v41 = vpop.permute.xlu1 %531  ;;  %v527_v42 = vpop.permute.xlu0 %526 }
  0xcf   :  { %1148 = vmatmul.mubr.msk.f32.vlgmr.msra.gmra.mrb[0].mxu0 %vm275_vm0, %v264_v58 }
  0xd0   :  { %1150 = vmatprep.mubr.msk.f32.mxu0 %vm275_vm0, %v265_v59  ;;  %v468_v43 = vpop.permute.xlu1 %467  ;;  %v463_v44 = vpop.permute.xlu0 %462 }
  0xd3   :  { %1151 = vmatmul.mubr.msk.f32.gmra.mrb[2].mxu0 %vm275_vm0, %v266_v60 }
  0xd4   :  { %1153 = vmatprep.mubr.msk.f32.mxu0 %vm275_vm0, %v267_v61  ;;  %v501_v45 = vpop.permute.xlu1 %500  ;;  %v496_v46 = vpop.permute.xlu0 %495 }
  0xd7   :  { %1154 = vmatmul.mubr.msk.f32.gmra.mrb[4].mxu0 %vm275_vm0, %v268_v62 }
  0xd8   :  { %1156 = vmatprep.mubr.msk.f32.mxu0 %vm275_vm0, %v269_v63  ;;  %v542_v47 = vpop.permute.xlu1 %541  ;;  %v537_v48 = vpop.permute.xlu0 %536 }
  0xdb   :  { %1157 = vmatmul.mubr.msk.f32.gmra.mrb[6].mxu0 %vm275_vm0, %v270_v0 }
  0xdc   :  { %1159 = vmatprep.mubr.msk.f32.mxu0 %vm275_vm0, %v271_v1 }
  0xdf   :  { %1160 = vmatmul.mubr.msk.f32.gmra.mrb[8].mxu0 %vm275_vm0, %v272_v2 }
  0xe0   :  { %1162 = vmatprep.mubr.msk.f32.mxu0 %vm275_vm0, %v273_v3 }
  0xe3   :  { %1163 = vmatmul.mubr.msk.f32.gmra.mrb[10].mxu0 %vm275_vm0, %v274_v4 }
 0x1a2   :  { %v1149_v5 = vpop.f32.mrb[0].mxu0 }
 0x1a3   :  { %439 = vrot.lane.b32.xlu1 %v1149_v5, %s1259_s24  ;;  %v378_v6 = vpop.f32.mrb[1].mxu0 }
 0x1a4   :  { %437 = vrot.lane.b32.xlu0 %v378_v6, %s1259_s24 }
 0x1a6   :  { %v1152_v8 = vpop.f32.mrb[2].mxu0 }
 0x1a7   :  { %443 = vrot.lane.b32.xlu1 %v1152_v8, %s1259_s24  ;;  %v388_v9 = vpop.f32.mrb[3].mxu0 }
 0x1a8   :  { %441 = vrot.lane.b32.xlu0 %v388_v9, %s1259_s24 }
 0x1aa   :  { %v1473_v10 = vpop.f32.mrb[4].mxu0 }
 0x1ab   :  { %v1475_v11 = vpop.f32.mrb[5].mxu0  ;;  %v504_v60 = vadd.f32 %v1473_v10, %v491_v39  ;;  %v1067_v39 = vld [vmem:[%s1656_s1 + $0xb8] sm:$0xff] }
 0x1ac   :  { %v503_v63 = vadd.f32 %v486_v40, %v1475_v11 }
 0x1ae   :  { %v1477_v12 = vpop.f32.mrb[6].mxu0 }
 0x1af   :  { %v1479_v13 = vpop.f32.mrb[7].mxu0  ;;  %v506_v9 = vadd.f32 %v1477_v12, %v501_v45 }
 0x1b2   :  { %v1161_v14 = vpop.f32.mrb[8].mxu0 }
 0x1b3   :  { %513 = vrot.lane.b32.xlu1 %v1161_v14, %s1260_s8  ;;  %v418_v17 = vpop.f32.mrb[9].mxu0 }
 0x1b4   :  { %511 = vrot.lane.b32.xlu0 %v418_v17, %s1260_s8 }
 0x1b6   :  { %v1164_v18 = vpop.f32.mrb[10].mxu0 }
 0x1b7   :  { %517 = vrot.lane.b32.xlu1 %v1164_v18, %s1260_s8  ;;  %v428_v19 = vpop.f32.mrb[11].mxu0  ;;  %v505_v18 = vadd.f32 %v496_v46, %v1479_v13  ;;  %v1057_v13 = vld [vmem:[%s1656_s1 + $0x68] sm:$0xff] }
 0x1b8   :  { %515 = vrot.lane.b32.xlu0 %v428_v19, %s1260_s8 }
 0x1bb   :  { %754 = vperm.xlu1 %1214, %v1081_v20  }
 0x1bc   :  { %749 = vperm.xlu0 %1213, %v1080_v21  }
 0x1bf   :  { %782 = vperm.xlu1 %1214, %v1084_v22  }
 0x1c0   :  { %759 = vperm.xlu0 %1213, %v1082_v23  }
 0x1c3   :  { %823 = vperm.xlu1 %1214, %v1088_v24  }
 0x1c4   :  { %787 = vperm.xlu0 %1213, %v1085_v25  }
 0x1c7   :  { %764 = vperm.xlu1 %1214, %v1083_v26  }
 0x1c8   :  { %828 = vperm.xlu0 %1213, %v1089_v27  }
 0x1cb   :  { %833 = vperm.xlu1 %1214, %v1090_v28  }
 0x1cc   :  { %792 = vperm.xlu0 %1213, %v1086_v29  }
 0x1cf   :  { %838 = vperm.xlu1 %1214, %v1091_v30   ;;  %v1058_v30 = vld [vmem:[%s1656_s1 + $0x70] sm:$0xff] }
 0x1d0   :  { %797 = vperm.xlu0 %1213, %v1087_v31   ;;  %v1059_v31 = vld [vmem:[%s1656_s1 + $0x78] sm:$0xff] }
 0x1d3   :  { %864 = vperm.xlu1 %1214, %v1092_v32   ;;  %v1060_v32 = vld [vmem:[%s1656_s1 + $0x80] sm:$0xff] }
 0x1d4   :  { %869 = vperm.xlu0 %1213, %v1093_v33   ;;  %v1061_v33 = vld [vmem:[%s1656_s1 + $0x88] sm:$0xff] }
 0x1d7   :  { %874 = vperm.xlu1 %1214, %v1094_v34   ;;  %v1062_v34 = vld [vmem:[%s1656_s1 + $0x90] sm:$0xff] }
 0x1d8   :  { %940 = vperm.xlu0 %1213, %v1100_v35   ;;  %v1063_v35 = vld [vmem:[%s1656_s1 + $0x98] sm:$0xff] }
 0x1db   :  { %945 = vperm.xlu1 %1214, %v1101_v36   ;;  %v1064_v36 = vld [vmem:[%s1656_s1 + $0xa0] sm:$0xff] }
 0x215   :  { %v440_v49 = vpop.permute.xlu1 %439 }
 0x216   :  { %v438_v50 = vpop.permute.xlu0 %437  ;;  %v471_v51 = vadd.f32 %v458_v37, %v440_v49  ;;  %v1065_v37 = vld [vmem:[%s1656_s1 + $0xa8] sm:$0xff] }
 0x217   :  { %v470_v52 = vadd.f32 %v453_v38, %v438_v50  ;;  %v1066_v38 = vld [vmem:[%s1656_s1 + $0xb0] sm:$0xff]  ;;  %v1095_v50 = vld [vmem:[%s1657_s2 + $0x198] sm:$0xff] }
 0x218   :  { %v475_v55 = vmul.f32 %v1413_v7, %v471_v51 }
 0x219   :  { %v444_v53 = vpop.permute.xlu1 %443  ;;  %v474_v57 = vmul.f32 %v1413_v7, %v470_v52 }
 0x21a   :  { %v442_v54 = vpop.permute.xlu0 %441  ;;  %v473_v56 = vadd.f32 %v468_v43, %v444_v53  ;;  %v508_v1 = vadd.f32 %v504_v60, %v475_v55  ;;  %v1103_v53 = vld [vmem:[%s1657_s2 + $0x1d8] sm:$0xff]  ;;  %v1097_v55 = vld [vmem:[%s1657_s2 + $0x1a8] sm:$0xff] }
 0x21b   :  { %v472_v58 = vadd.f32 %v463_v44, %v442_v54  ;;  %v507_v4 = vadd.f32 %v503_v63, %v474_v57  ;;  %v1102_v54 = vld [vmem:[%s1657_s2 + $0x1d0] sm:$0xff]  ;;  %v1099_v57 = vld [vmem:[%s1657_s2 + $0x1b8] sm:$0xff] }
 0x21c   :  { %v477_v2 = vmul.f32 %v1413_v7, %v473_v56  ;;  %v1096_v56 = vld [vmem:[%s1657_s2 + $0x1a0] sm:$0xff] }
 0x21d   :  { %v476_v5 = vmul.f32 %v1413_v7, %v472_v58  ;;  %v1098_v58 = vld [vmem:[%s1657_s2 + $0x1b0] sm:$0xff]  ;;  %s973_s2 = sld [smem:[#allocation2]] }
 0x21e   :  { %v510_v19 = vadd.f32 %v506_v9, %v477_v2 }
 0x21f   :  { %v509_v22 = vadd.f32 %v505_v18, %v476_v5 }
 0x225   :  { %v514_v59 = vpop.permute.xlu1 %513 }
 0x226   :  { %v545_v61 = vadd.f32 %v532_v41, %v514_v59  ;;  %v512_v62 = vpop.permute.xlu0 %511 }
 0x227   :  { %v544_v0 = vadd.f32 %v527_v42, %v512_v62 }
 0x228   :  { %v549_v3 = vmul.f32 %v1415_v15, %v545_v61 }
 0x229   :  { %v548_v6 = vmul.f32 %v1415_v15, %v544_v0  ;;  %v518_v8 = vpop.permute.xlu1 %517 }
 0x22a   :  { %v547_v14 = vadd.f32 %v542_v47, %v518_v8  ;;  %v516_v10 = vpop.permute.xlu0 %515  ;;  %v553_v17 = vadd.f32 %v549_v3, %v508_v1 }
 0x22b   :  { %v546_v11 = vadd.f32 %v537_v48, %v516_v10  ;;  %v552_v16 = vadd.f32 %v548_v6, %v507_v4 }
 0x22c   :  { %v551_v20 = vmul.f32 %v1415_v15, %v547_v14  ;;  %v557_v21 = vmax.f32 %v553_v17, 0.0 }
 0x22d   :  { %v550_v23 = vmul.f32 %v1415_v15, %v546_v11  ;;  %v556_v24 = vmax.f32 %v552_v16, 0.0 }
 0x22e   :  { %v555_v25 = vadd.f32 %v551_v20, %v510_v19 }
 0x22f   :  { %v554_v26 = vadd.f32 %v550_v23, %v509_v22  ;;  %v1199_v27 = vpack.c.bf16 %v557_v21, %v556_v24 }
 0x230   :  { %v559_v28 = vmax.f32 %v555_v25, 0.0 }
 0x231   :  { %v558_v12 = vmax.f32 %v554_v26, 0.0  ;;  %1200 = vmatprep.subr.bf16.mxu1 %v1199_v27 }
 0x232   :  { %1202 = vmatpush3.bf16.msra.mxu1 %v1199_v27 }
 0x233   :  { %v1203_v29 = vpack.c.bf16 %v559_v28, %v558_v12 }
 0x235   :  { %1204 = vmatprep.subr.bf16.mxu1 %v1203_v29 }
 0x236   :  { %1206 = vmatpush3.bf16.msra.mxu1 %v1203_v29 }
 0x239   :  { %1174 = vmatmul.mubr.msk.f32.vlgmr.msra.gmra.mrb[0].mxu1 %vm275_vm0, %v1057_v13 }
 0x23a   :  { %1176 = vmatprep.mubr.msk.f32.mxu1 %vm275_vm0, %v1058_v30  ;;  %v755_v59 = vpop.permute.xlu1 %754 }
 0x23b   :  { %v750_v60 = vpop.permute.xlu0 %749 }
 0x23d   :  { %1177 = vmatmul.mubr.msk.f32.gmra.mrb[2].mxu1 %vm275_vm0, %v1059_v31 }
 0x23e   :  { %1179 = vmatprep.mubr.msk.f32.mxu1 %vm275_vm0, %v1060_v32  ;;  %v783_v61 = vpop.permute.xlu1 %782 }
 0x23f   :  { %v760_v62 = vpop.permute.xlu0 %759 }
 0x241   :  { %1180 = vmatmul.mubr.msk.f32.gmra.mrb[4].mxu1 %vm275_vm0, %v1061_v33 }
 0x242   :  { %1182 = vmatprep.mubr.msk.f32.mxu1 %vm275_vm0, %v1062_v34  ;;  %v824_v63 = vpop.permute.xlu1 %823 }
 0x243   :  { %v788_v0 = vpop.permute.xlu0 %787 }
 0x245   :  { %1183 = vmatmul.mubr.msk.f32.gmra.mrb[6].mxu1 %vm275_vm0, %v1063_v35 }
 0x246   :  { %1185 = vmatprep.mubr.msk.f32.mxu1 %vm275_vm0, %v1064_v36  ;;  %v765_v1 = vpop.permute.xlu1 %764 }
 0x247   :  { %v829_v2 = vpop.permute.xlu0 %828 }
 0x249   :  { %1186 = vmatmul.mubr.msk.f32.gmra.mrb[8].mxu1 %vm275_vm0, %v1065_v37 }
 0x24a   :  { %1188 = vmatprep.mubr.msk.f32.mxu1 %vm275_vm0, %v1066_v38  ;;  %v834_v3 = vpop.permute.xlu1 %833 }
 0x24b   :  { %v793_v4 = vpop.permute.xlu0 %792 }
 0x24d   :  { %1189 = vmatmul.mubr.msk.f32.gmra.mrb[10].mxu1 %vm275_vm0, %v1067_v39 }
 0x24e   :  { %v839_v5 = vpop.permute.xlu1 %838 }
 0x24f   :  { %v798_v6 = vpop.permute.xlu0 %797 }
 0x252   :  { %v865_v8 = vpop.permute.xlu1 %864 }
 0x253   :  { %v870_v9 = vpop.permute.xlu0 %869 }
 0x256   :  { %v875_v14 = vpop.permute.xlu1 %874 }
 0x257   :  { %v941_v10 = vpop.permute.xlu0 %940 }
 0x25a   :  { %v946_v17 = vpop.permute.xlu1 %945 }
 0x30c   :  { %v1175_v40 = vpop.f32.mrb[0].mxu1 }
 0x30d   :  { %736 = vrot.lane.b32.xlu1 %v1175_v40, %s1259_s24  ;;  %v675_v41 = vpop.f32.mrb[1].mxu1 }
 0x30e   :  { %734 = vrot.lane.b32.xlu0 %v675_v41, %s1259_s24 }
 0x310   :  { %v1178_v42 = vpop.f32.mrb[2].mxu1 }
 0x311   :  { %740 = vrot.lane.b32.xlu1 %v1178_v42, %s1259_s24  ;;  %v685_v43 = vpop.f32.mrb[3].mxu1 }
 0x312   :  { %738 = vrot.lane.b32.xlu0 %v685_v43, %s1259_s24 }
 0x314   :  { %v1181_v44 = vpop.f32.mrb[4].mxu1 }
 0x315   :  { %v695_v45 = vpop.f32.mrb[5].mxu1  ;;  %v801_v25 = vadd.f32 %v1181_v44, %v788_v0 }
 0x316   :  { %v800_v28 = vadd.f32 %v783_v61, %v695_v45 }
 0x318   :  { %v1600_v46 = vpop.f32.mrb[6].mxu1 }
 0x319   :  { %v1602_v47 = vpop.f32.mrb[7].mxu1  ;;  %v803_v41 = vadd.f32 %v1600_v46, %v798_v6 }
 0x31a   :  { %v802_v42 = vadd.f32 %v793_v4, %v1602_v47 }
 0x31c   :  { %v1187_v48 = vpop.f32.mrb[8].mxu1 }
 0x31d   :  { %810 = vrot.lane.b32.xlu0 %v1187_v48, %s1260_s8  ;;  %v715_v49 = vpop.f32.mrb[9].mxu1 }
 0x31e   :  { %808 = vrot.lane.b32.xlu1 %v715_v49, %s1260_s8 }
 0x320   :  { %v1190_v51 = vpop.f32.mrb[10].mxu1 }
 0x321   :  { %814 = vrot.lane.b32.xlu0 %v1190_v51, %s1260_s8  ;;  %v725_v52 = vpop.f32.mrb[11].mxu1 }
 0x322   :  { %879 = vperm.xlu1 %1214, %v1095_v50  }
 0x325   :  { %812 = vrot.lane.b32.xlu0 %v725_v52, %s1260_s8 }
 0x326   :  { %955 = vperm.xlu1 %1214, %v1103_v53  }
 0x329   :  { %950 = vperm.xlu0 %1213, %v1102_v54  }
 0x32a   :  { %907 = vperm.xlu1 %1214, %v1097_v55  }
 0x32d   :  { %902 = vperm.xlu0 %1213, %v1096_v56  }
 0x32e   :  { %917 = vperm.xlu1 %1214, %v1099_v57  }
 0x331   :  { %912 = vperm.xlu0 %1213, %v1098_v58  }
 0x37f   :  { %v737_v11 = vpop.permute.xlu1 %736 }
 0x380   :  { %v735_v18 = vpop.permute.xlu0 %734  ;;  %v768_v16 = vadd.f32 %v755_v59, %v737_v11 }
 0x381   :  { %v767_v19 = vadd.f32 %v750_v60, %v735_v18 }
 0x382   :  { %v772_v22 = vmul.f32 %v1413_v7, %v768_v16 }
 0x383   :  { %v741_v21 = vpop.permute.xlu1 %740  ;;  %v771_v23 = vmul.f32 %v1413_v7, %v767_v19 }
 0x384   :  { %v739_v20 = vpop.permute.xlu0 %738  ;;  %v805_v29 = vadd.f32 %v801_v25, %v772_v22  ;;  %v770_v13 = vadd.f32 %v765_v1, %v741_v21 }
 0x385   :  { %v769_v30 = vadd.f32 %v760_v62, %v739_v20  ;;  %v804_v32 = vadd.f32 %v800_v28, %v771_v23 }
 0x386   :  { %v774_v38 = vmul.f32 %v1413_v7, %v770_v13 }
 0x387   :  { %v773_v39 = vmul.f32 %v1413_v7, %v769_v30 }
 0x388   :  { %v807_v53 = vadd.f32 %v803_v41, %v774_v38  ;;  %v978_v41 = vstv %s1104_s5 }
 0x389   :  { %v806_v54 = vadd.f32 %v802_v42, %v773_v39  ;;  %v984_v42 = vstv %s1105_s6 }
 0x38f   :  { %v811_v24 = vpop.permute.xlu0 %810 }
 0x390   :  { %v842_v26 = vadd.f32 %v829_v2, %v811_v24  ;;  %v809_v27 = vpop.permute.xlu1 %808 }
 0x391   :  { %v841_v12 = vadd.f32 %v824_v63, %v809_v27 }
 0x392   :  { %v846_v31 = vmul.f32 %v1415_v15, %v842_v26 }
 0x393   :  { %v845_v33 = vmul.f32 %v1415_v15, %v841_v12  ;;  %v815_v34 = vpop.permute.xlu0 %814 }
 0x394   :  { %v850_v35 = vadd.f32 %v846_v31, %v805_v29  ;;  %v844_v36 = vadd.f32 %v839_v5, %v815_v34 }
 0x395   :  { %v849_v37 = vadd.f32 %v845_v33, %v804_v32 }
 0x396   :  { %v854_v40 = vmax.f32 %v850_v35, 0.0  ;;  %v848_v45 = vmul.f32 %v1415_v15, %v844_v36  ;;  %v974_v36 = vstv %s973_s2 }
 0x397   :  { %v853_v43 = vmax.f32 %v849_v37, 0.0  ;;  %v813_v44 = vpop.permute.xlu0 %812 }
 0x398   :  { %v843_v48 = vadd.f32 %v834_v3, %v813_v44  ;;  %v883_v49 = vmul.f32 %v870_v9, %v854_v40  ;;  %v959_v50 = vmul.f32 %v946_v17, %v854_v40  ;;  %v852_v58 = vadd.f32 %v848_v45, %v807_v53 }
 0x399   :  { %v882_v51 = vmul.f32 %v865_v8, %v853_v43  ;;  %v958_v52 = vmul.f32 %v941_v10, %v853_v43 }
 0x39a   :  { %v847_v55 = vmul.f32 %v1415_v15, %v843_v48  ;;  %v856_v60 = vmax.f32 %v852_v58, 0.0 }
 0x39b   :  { %v886_v56 = vadd.f32 %v883_v49, %v882_v51  ;;  %v962_v57 = vadd.f32 %v959_v50, %v958_v52 }
 0x39c   :  { %v851_v59 = vadd.f32 %v847_v55, %v806_v54 }
 0x39e   :  { %v855_v46 = vmax.f32 %v851_v59, 0.0 }
 0x3a0   :  { %v884_v47 = vmul.f32 %v875_v14, %v855_v46 }
 0x3a1   :  { %v880_v61 = vpop.permute.xlu1 %879 }
 0x3a2   :  { %v885_v62 = vmul.f32 %v880_v61, %v856_v60  ;;  %v887_v63 = vadd.f32 %v886_v56, %v884_v47 }
 0x3a4   :  { %v888_v0 = vadd.f32 %v887_v63, %v885_v62 }
 0x3a5   :  { %v956_v1 = vpop.permute.xlu1 %955 }
 0x3a6   :  { %v889_v2 = vrot.slane %v888_v0, 4  ;;  %v961_v9 = vmul.f32 %v956_v1, %v856_v60 }
 0x3a8   :  { %v890_v3 = vadd.f32 %v889_v2, %v888_v0  ;;  %v951_v4 = vpop.permute.xlu0 %950 }
 0x3a9   :  { %v960_v5 = vmul.f32 %v951_v4, %v855_v46  ;;  %v908_v8 = vpop.permute.xlu1 %907 }
 0x3aa   :  { %v891_v6 = vrot.slane %v890_v3, 2  ;;  %v921_v16 = vmul.f32 %v908_v8, %v854_v40 }
 0x3ab   :  { %v963_v10 = vadd.f32 %v962_v57, %v960_v5 }
 0x3ac   :  { %v903_v17 = vpop.permute.xlu0 %902  ;;  %v892_v18 = vadd.f32 %v891_v6, %v890_v3 }
 0x3ad   :  { %v964_v11 = vadd.f32 %v963_v10, %v961_v9  ;;  %v920_v19 = vmul.f32 %v903_v17, %v853_v43  ;;  %v918_v22 = vpop.permute.xlu1 %917 }
 0x3ae   :  { %v893_v20 = vrot.slane %v892_v18, 1  ;;  %v923_v27 = vmul.f32 %v918_v22, %v856_v60 }
 0x3af   :  { %v965_v14 = vrot.slane %v964_v11, 4  ;;  %v924_v21 = vadd.f32 %v921_v16, %v920_v19 }
 0x3b0   :  { %v913_v23 = vpop.permute.xlu0 %912  ;;  %v894_v24 = vadd.f32 %v893_v20, %v892_v18 }
 0x3b1   :  { %v966_v25 = vadd.f32 %v965_v14, %v964_v11  ;;  %v922_v26 = vmul.f32 %v913_v23, %v855_v46 }
 0x3b2   :  { %971 = vrot.lane.b32.xlu0 %v894_v24, %s1259_s24  ;;  %s1262_s24 = smov [#allocation5]  }
 0x3b3   :  { %v925_v28 = vadd.f32 %v924_v21, %v922_v26  ;;  %v967_v12 = vrot.slane %v966_v25, 2 }
 0x3b5   :  { %v926_v29 = vadd.f32 %v925_v28, %v923_v27  ;;  %v968_v13 = vadd.f32 %v967_v12, %v966_v25 }
 0x3b7   :  { %v969_v30 = vrot.slane %v968_v13, 1  ;;  %v927_v32 = vrot.slane %v926_v29, 4 }
 0x3b9   :  { %v970_v31 = vadd.f32 %v969_v30, %v968_v13  ;;  %v928_v33 = vadd.f32 %v927_v32, %v926_v29 }
 0x3bb   :  { %981 = vrot.lane.b32.xlu1 %v970_v31, %s1260_s8  ;;  %v929_v34 = vrot.slane %v928_v33, 2  ;;  %s1001_s8 = sshll.u32 %s1262_s24, 4  ;;  %s1002_s8 = int_to_ptr.vmem [resolvable:$true] %s1001_s8 }
 0x3bc   :  { %s1231_s7 = scalar_lea.vmem %s1002_s8, 16  ;;  %s1235_s9 = scalar_lea.vmem %s1002_s8, 32 }
 0x3bd   :  { %v930_v35 = vadd.f32 %v929_v34, %v928_v33  ;;  %p1232_p5 = scmp.ne.s32.totalorder %s1002_s8, %s1231_s7  ;;  %p1236_p6 = scmp.lt.s32.totalorder %s1002_s8, %s1002_s8 }
 0x3be   :  { %p1237_p7 = scmp.lt.s32.totalorder %s1235_s9, %s1231_s7 }
 0x3bf   :  { %v931_v38 = vrot.slane %v930_v35, 1 }
 0x3c0   :  { %p1238_p8 = por %p1237_p7, %p1236_p6 }
 0x3c1   :  { %v932_v40 = vadd.f32 %v931_v38, %v930_v35 }
 0x3c2   :  { %p1239_p9 = pnand %p1238_p8, %p1232_p5 }
 0x3c3   :  { %v979_v45 = vadd.f32 %v978_v41, %v932_v40 }
 0x424   :  { %v972_v37 = vpop.permute.xlu0 %971 }
 0x425   :  { %v975_v39 = vadd.f32 %v974_v36, %v972_v37 }
 0x427   :  { %v976_v43 = vmul.f32 %v1413_v7, %v975_v39 }
 0x429   :  { %v980_v49 = vadd.f32 %v979_v45, %v976_v43 }
 0x42d   :  { %v982_v44 = vpop.permute.xlu1 %981 }
 0x42e   :  { %v985_v48 = vadd.f32 %v984_v42, %v982_v44 }
 0x430   :  { %v986_v50 = vmul.f32 %v1415_v15, %v985_v48 }
 0x432   :  { %v987_v51 = vadd.f32 %v986_v50, %v980_v49 }
 0x434   :  { %v1106_v52 = vmul.f32 -1.442695, %v987_v51 }
 0x436   :  { %1215 = vpow2.f32 %v1106_v52 }
 0x440   :  { %v1216_v53 = vpop.eup %1215 }
 0x441   :  { %v991_v54 = vadd.f32 1.0, %v1216_v53 }
 0x443   :  { %1217 = vrcp.f32 %v991_v54 }
 0x44d   :  { %v1218_v55 = vpop.eup %1217 }
 0x44e   :  { %994 = vst [vmem:[#allocation5] sm:$0x1] %v1218_v55 }
 0x44f   :  { %1242 = shalt.err (!%p1239_p9)
}
 0x450   :  { %s1243_s12 = scalar_lea.hbm %s1659_s4, 16 }
 0x451   :  { %p1244_p10 = scmp.ne.s32.totalorder %s1659_s4, %s1243_s12  ;;  %p1247_p11 = scmp.lt.u32.totalorder %s1243_s12, %s1659_s4 }
 0x453   :  { %p1249_p12 = pnand %p1247_p11, %p1244_p10 }
 0x455   :  { %1252 = shalt.err (!%p1249_p12)
}
 0x456   :  { %1004 = dma.vmem_to_hbm [thread:$0]  %s1002_s8, 16, %s1659_s4, [#allocation3]  }
 0x457   :  { %1255 = dma.done.wait [#allocation3], 16  }
 0x458   :  { %1256 = vsyncadd [#allocation3], 4294967280 }
 0x459   :  { %1008 = vsyncpa [#allocation3], 1 }
 0x45a   :  { %1009 = vsyncpa [#allocation4], 1 }

</bundles_post_ra>
